<compile_context>
chip_gen: v6e
topology: v6e:2x2x1
jax: 0.10.0
libtpu: 0.0.40
codegen_flags: <defaults>
</compile_context>

<pallas_src>
import jax
import jax.numpy as jnp
from jax.experimental import pallas as pl
from jax.experimental.pallas import tpu as pltpu


def attention_sentiment_kernel(
    idx_ref,     # SMEM (N, L) int32 token ids (scalar prefetch)
    tab_ref,     # VMEM (V, E) f32   embedding table, resident (constant index_map)
    wqk_ref,     # VMEM (E, 2E) bf16 fused, pre-transposed q/k weight (scale folded into q)
    bqk_ref,     # VMEM (1, 2E) f32  fused q/k bias (scale folded into q part)
    wvf_ref,     # VMEM (1, B, E) f32 per-batch folded (Wv -> out_proj -> fc1) weight rows
    out_ref,     # VMEM (1, B, L) f32 per-step partials (lane-dense: L is the lane dim)
    emb_scr,     # scratch VMEM (B*L, E) f32 gathered embeddings for this grid step
):
    g = pl.program_id(0)
    _, B, E = wvf_ref.shape
    L = out_ref.shape[2]

    # ---- embedding gather: dynamic sublane reads from the VMEM-resident table ----
    for b in range(B):                      # B, L static -> fully unrolled
        n = g * B + b
        for l in range(L):
            tok = idx_ref[n, l]
            emb_scr[pl.ds(b * L + l, 1), :] = tab_ref[pl.ds(tok, 1), :]

    emb2 = emb_scr[...]                     # (B*L, E) f32
    emb = emb2.reshape(B, L, E)             # (B, L, E) f32 (kept f32 for the folded matvec)

    # ---- fused q/k projection: one (B*L, E) x (E, 2E) bf16 MXU pass, f32 accumulate ----
    qk = jnp.dot(emb2.astype(jnp.bfloat16), wqk_ref[...],
                 preferred_element_type=jnp.float32) + bqk_ref[...]     # (B*L, 2E) f32
    q = qk[:, :E].reshape(B, L, E)
    k = qk[:, E:].reshape(B, L, E)

    # ---- batched scaled dot-product attention (scale already folded into q weights) ----
    s = jnp.einsum('ble,bme->blm',
                   q.astype(jnp.bfloat16), k.astype(jnp.bfloat16),
                   preferred_element_type=jnp.float32)                  # (B, L, L) f32
    s = s - jnp.max(s, axis=-1, keepdims=True)                          # stable softmax, f32
    p = jnp.exp(s)
    attn = p * pl.reciprocal(jnp.sum(p, axis=-1, keepdims=True), approx=True)

    # ---- folded (v -> out_proj -> fc1) matvec: u[b, m] = emb[b, m, :] . wv_fold[b, :] ----
    wvf = wvf_ref[0]                                                    # (B, E) f32
    u = jnp.sum(emb * wvf[:, None, :], axis=-1)                         # (B, L) f32

    # ---- partial[b, l] = attn[b, l, :] . u[b, :]  (replaces attn@V + fc1 reduce) ----
    partial = jnp.sum(attn * u[:, None, :], axis=-1)                    # (B, L) f32

    out_ref[...] = partial.reshape(1, B, L)                             # lane-dense write


def attention_sentiment(idx, params, batch_block=None):
    L, N = idx.shape
    V, E = params['emb'].shape

    # Batch elements per grid step: amortize per-step overhead / fill MXU rows, but keep
    # >=2 grid steps when possible so the parallel grid axis still shards across v7x's 2 TCs.
    if batch_block is None:
        batch_block = N // 2 if (N % 2 == 0 and N >= 4) else N
    B = batch_block
    assert N % B == 0, "batch_block must divide N"
    G = N // B

    # ---- host-side layout plumbing / algebraic folds (free; outside the kernel) ----
    idx_nl = jnp.asarray(idx.T, dtype=jnp.int32)                        # (N, L)
    tab = params['emb'].astype(jnp.float32)                             # VMEM-resident table
    # TODO(synk): for huge vocabularies (table >> VMEM) switch this input to
    #             memory_space=pl.ANY and a double-buffered per-row DMA gather.
    scale = 1.0 / (E ** 0.5)
    wqk_t = jnp.concatenate([params['wq'] * scale, params['wk']],
                            axis=0).T.astype(jnp.bfloat16)              # (E, 2E)
    bqk = jnp.concatenate([params['bq'] * scale, params['bk']]
                          ).reshape(1, 2 * E).astype(jnp.float32)       # (1, 2E)
    w1r = params['w1'].reshape(N, E)                                    # row-major fc1 weight
    w1_eff = w1r @ params['wo']                                         # out_proj folded into fc1
    wv_fold = (w1_eff @ params['wv']).reshape(G, B, E).astype(jnp.float32)  # Wv folded in too
    # bo, b1 and bv's contribution (softmax rows sum to 1) all collapse to one scalar:
    const = (jnp.sum(w1r * params['bo'][None, :])
             + params['b1'][0]
             + jnp.sum(w1_eff @ params['bv']))

    grid_spec = pltpu.PrefetchScalarGridSpec(
        num_scalar_prefetch=1,
        grid=(G,),
        in_specs=[
            pl.BlockSpec((V, E), lambda g, ids: (0, 0)),        # embedding table (resident)
            pl.BlockSpec((E, 2 * E), lambda g, ids: (0, 0)),    # fused q/k weight (resident)
            pl.BlockSpec((1, 2 * E), lambda g, ids: (0, 0)),    # fused q/k bias
            pl.BlockSpec((1, B, E), lambda g, ids: (g, 0, 0)),  # per-batch folded v/fc1 rows
        ],
        out_specs=pl.BlockSpec((1, B, L), lambda g, ids: (g, 0, 0)),
        scratch_shapes=[pltpu.VMEM((B * L, E), jnp.float32)],
    )

    partials = pl.pallas_call(
        attention_sentiment_kernel,
        out_shape=jax.ShapeDtypeStruct((G, B, L), jnp.float32),
        grid_spec=grid_spec,
        compiler_params=pltpu.CompilerParams(
            dimension_semantics=("parallel",),        # batch-group axis -> megacore on v7x
            vmem_limit_bytes=32 * 1024 * 1024),
    )(idx_nl, tab, wqk_t, bqk, wv_fold)

    # tiny cross-batch reduction + folded bias constant, done by XLA so the grid stays parallel
    return partials.sum(axis=(0, 1)) + const                            # (L,), matches .squeeze()


def reference(idx, params):
    """Plain-JAX f32 replica of the PyTorch forward, for verification."""
    tab = params['emb']
    E = tab.shape[1]
    emb = tab[idx]                                            # (L, N, E)
    q = emb @ params['wq'].T + params['bq']
    k = emb @ params['wk'].T + params['bk']
    v = emb @ params['wv'].T + params['bv']
    q = q / jnp.sqrt(jnp.float32(E))
    scores = jnp.einsum('lne,mne->nlm', q, k)
    attn = jax.nn.softmax(scores, axis=-1)
    ctx = jnp.einsum('nlm,mne->lne', attn, v)
    res = ctx @ params['wo'].T + params['bo']                 # (L, N, E)
    flat = res.reshape(res.shape[0], -1)                      # (L, N*E)
    return (flat @ params['w1'].T).squeeze() + params['b1'][0]


if __name__ == "__main__":
    L, N, E, V = 8, 4, 128, 64        # (seq, batch, embed, vocab); fc1 in_features = N*E

    key = jax.random.PRNGKey(0)
    ks = jax.random.split(key, 12)
    params = {
        'emb': jax.random.normal(ks[0], (V, E), jnp.float32) * 0.5,
        'wq':  jax.random.normal(ks[1], (E, E), jnp.float32) * 0.05,
        'wk':  jax.random.normal(ks[2], (E, E), jnp.float32) * 0.05,
        'wv':  jax.random.normal(ks[3], (E, E), jnp.float32) * 0.05,
        'bq':  jax.random.normal(ks[4], (E,),   jnp.float32) * 0.05,
        'bk':  jax.random.normal(ks[5], (E,),   jnp.float32) * 0.05,
        'bv':  jax.random.normal(ks[6], (E,),   jnp.float32) * 0.05,
        'wo':  jax.random.normal(ks[7], (E, E), jnp.float32) * 0.05,
        'bo':  jax.random.normal(ks[8], (E,),   jnp.float32) * 0.05,
        'w1':  jax.random.normal(ks[9], (1, N * E), jnp.float32) * 0.05,
        'b1':  jax.random.normal(ks[10], (1,),  jnp.float32) * 0.05,
    }
    input_words = jax.random.randint(ks[11], (L, N), 0, V, dtype=jnp.int32)

    out = attention_sentiment(input_words, params)
    out = jax.block_until_ready(out)

    ref = reference(input_words, params)
    assert out.shape == (L,)
    # bf16 MXU operands -> compare against the f32 reference at bf16 tolerance
    assert jnp.allclose(out, ref, rtol=2e-2, atol=2e-2), (out, ref)

    print("KERNEL_OK")
</pallas_src>

<mosaic_0001>
module attributes {stable_mosaic.version = 11 : i64} {
  func.func @attention_sentiment_kernel(%arg0: i32, %arg1: memref<4x8xi32, #tpu.memory_space<smem>>, %arg2: memref<64x128xf32, #tpu.memory_space<vmem>>, %arg3: memref<128x256xbf16, #tpu.memory_space<vmem>>, %arg4: memref<1x256xf32, #tpu.memory_space<vmem>>, %arg5: memref<1x2x128xf32, #tpu.memory_space<vmem>>, %arg6: memref<1x2x8xf32, #tpu.memory_space<vmem>>, %arg7: memref<16x128xf32, #tpu.memory_space<vmem>>) attributes {dimension_semantics = [#tpu.dimension_semantics<parallel>], iteration_bounds = array<i64: 2>, scalar_prefetch = 1 : i64, scratch_operands = 1 : i64, tpu.core_type = #tpu.core_type<tc>, window_params = [{pipeline_mode = #tpu.pipeline_mode<synchronous>, transform_indices = @transform_0, window_bounds = array<i64: 64, 128>}, {pipeline_mode = #tpu.pipeline_mode<synchronous>, transform_indices = @transform_1, window_bounds = array<i64: 128, 256>}, {pipeline_mode = #tpu.pipeline_mode<synchronous>, transform_indices = @transform_2, window_bounds = array<i64: 1, 256>}, {transform_indices = @transform_3, window_bounds = array<i64: 1, 2, 128>}, {transform_indices = @transform_4, window_bounds = array<i64: 1, 2, 8>}]} {
    %c2_i32 = arith.constant 2 : i32
    %0 = arith.muli %arg0, %c2_i32 : i32
    %c0_i32 = arith.constant 0 : i32
    %1 = arith.addi %0, %c0_i32 : i32
    %2 = arith.index_cast %1 : i32 to index
    %c0 = arith.constant 0 : index
    %3 = memref.load %arg1[%2, %c0] : memref<4x8xi32, #tpu.memory_space<smem>>
    %4 = arith.index_cast %3 : i32 to index
    %c0_0 = arith.constant 0 : index
    %5 = vector.load %arg2[%4, %c0_0] : memref<64x128xf32, #tpu.memory_space<vmem>>, vector<1x128xf32>
    %c0_1 = arith.constant 0 : index
    %c0_2 = arith.constant 0 : index
    %6 = vector.load %arg7[%c0_1, %c0_2] : memref<16x128xf32, #tpu.memory_space<vmem>>, vector<1x128xf32>
    tpu.vector_store %arg7[%c0_1, %c0_2], %5 {strides = array<i32>} : memref<16x128xf32, #tpu.memory_space<vmem>>, vector<1x128xf32>,
    %7 = arith.index_cast %1 : i32 to index
    %c1 = arith.constant 1 : index
    %8 = memref.load %arg1[%7, %c1] : memref<4x8xi32, #tpu.memory_space<smem>>
    %9 = arith.index_cast %8 : i32 to index
    %c0_3 = arith.constant 0 : index
    %10 = vector.load %arg2[%9, %c0_3] : memref<64x128xf32, #tpu.memory_space<vmem>>, vector<1x128xf32>
    %c1_4 = arith.constant 1 : index
    %c0_5 = arith.constant 0 : index
    %11 = vector.load %arg7[%c1_4, %c0_5] : memref<16x128xf32, #tpu.memory_space<vmem>>, vector<1x128xf32>
    tpu.vector_store %arg7[%c1_4, %c0_5], %10 {strides = array<i32>} : memref<16x128xf32, #tpu.memory_space<vmem>>, vector<1x128xf32>,
    %12 = arith.index_cast %1 : i32 to index
    %c2 = arith.constant 2 : index
    %13 = memref.load %arg1[%12, %c2] : memref<4x8xi32, #tpu.memory_space<smem>>
    %14 = arith.index_cast %13 : i32 to index
    %c0_6 = arith.constant 0 : index
    %15 = vector.load %arg2[%14, %c0_6] : memref<64x128xf32, #tpu.memory_space<vmem>>, vector<1x128xf32>
    %c2_7 = arith.constant 2 : index
    %c0_8 = arith.constant 0 : index
    %16 = vector.load %arg7[%c2_7, %c0_8] : memref<16x128xf32, #tpu.memory_space<vmem>>, vector<1x128xf32>
    tpu.vector_store %arg7[%c2_7, %c0_8], %15 {strides = array<i32>} : memref<16x128xf32, #tpu.memory_space<vmem>>, vector<1x128xf32>,
    %17 = arith.index_cast %1 : i32 to index
    %c3 = arith.constant 3 : index
    %18 = memref.load %arg1[%17, %c3] : memref<4x8xi32, #tpu.memory_space<smem>>
    %19 = arith.index_cast %18 : i32 to index
    %c0_9 = arith.constant 0 : index
    %20 = vector.load %arg2[%19, %c0_9] : memref<64x128xf32, #tpu.memory_space<vmem>>, vector<1x128xf32>
    %c3_10 = arith.constant 3 : index
    %c0_11 = arith.constant 0 : index
    %21 = vector.load %arg7[%c3_10, %c0_11] : memref<16x128xf32, #tpu.memory_space<vmem>>, vector<1x128xf32>
    tpu.vector_store %arg7[%c3_10, %c0_11], %20 {strides = array<i32>} : memref<16x128xf32, #tpu.memory_space<vmem>>, vector<1x128xf32>,
    %22 = arith.index_cast %1 : i32 to index
    %c4 = arith.constant 4 : index
    %23 = memref.load %arg1[%22, %c4] : memref<4x8xi32, #tpu.memory_space<smem>>
    %24 = arith.index_cast %23 : i32 to index
    %c0_12 = arith.constant 0 : index
    %25 = vector.load %arg2[%24, %c0_12] : memref<64x128xf32, #tpu.memory_space<vmem>>, vector<1x128xf32>
    %c4_13 = arith.constant 4 : index
    %c0_14 = arith.constant 0 : index
    %26 = vector.load %arg7[%c4_13, %c0_14] : memref<16x128xf32, #tpu.memory_space<vmem>>, vector<1x128xf32>
    tpu.vector_store %arg7[%c4_13, %c0_14], %25 {strides = array<i32>} : memref<16x128xf32, #tpu.memory_space<vmem>>, vector<1x128xf32>,
    %27 = arith.index_cast %1 : i32 to index
    %c5 = arith.constant 5 : index
    %28 = memref.load %arg1[%27, %c5] : memref<4x8xi32, #tpu.memory_space<smem>>
    %29 = arith.index_cast %28 : i32 to index
    %c0_15 = arith.constant 0 : index
    %30 = vector.load %arg2[%29, %c0_15] : memref<64x128xf32, #tpu.memory_space<vmem>>, vector<1x128xf32>
    %c5_16 = arith.constant 5 : index
    %c0_17 = arith.constant 0 : index
    %31 = vector.load %arg7[%c5_16, %c0_17] : memref<16x128xf32, #tpu.memory_space<vmem>>, vector<1x128xf32>
    tpu.vector_store %arg7[%c5_16, %c0_17], %30 {strides = array<i32>} : memref<16x128xf32, #tpu.memory_space<vmem>>, vector<1x128xf32>,
    %32 = arith.index_cast %1 : i32 to index
    %c6 = arith.constant 6 : index
    %33 = memref.load %arg1[%32, %c6] : memref<4x8xi32, #tpu.memory_space<smem>>
    %34 = arith.index_cast %33 : i32 to index
    %c0_18 = arith.constant 0 : index
    %35 = vector.load %arg2[%34, %c0_18] : memref<64x128xf32, #tpu.memory_space<vmem>>, vector<1x128xf32>
    %c6_19 = arith.constant 6 : index
    %c0_20 = arith.constant 0 : index
    %36 = vector.load %arg7[%c6_19, %c0_20] : memref<16x128xf32, #tpu.memory_space<vmem>>, vector<1x128xf32>
    tpu.vector_store %arg7[%c6_19, %c0_20], %35 {strides = array<i32>} : memref<16x128xf32, #tpu.memory_space<vmem>>, vector<1x128xf32>,
    %37 = arith.index_cast %1 : i32 to index
    %c7 = arith.constant 7 : index
    %38 = memref.load %arg1[%37, %c7] : memref<4x8xi32, #tpu.memory_space<smem>>
    %39 = arith.index_cast %38 : i32 to index
    %c0_21 = arith.constant 0 : index
    %40 = vector.load %arg2[%39, %c0_21] : memref<64x128xf32, #tpu.memory_space<vmem>>, vector<1x128xf32>
    %c7_22 = arith.constant 7 : index
    %c0_23 = arith.constant 0 : index
    %41 = vector.load %arg7[%c7_22, %c0_23] : memref<16x128xf32, #tpu.memory_space<vmem>>, vector<1x128xf32>
    tpu.vector_store %arg7[%c7_22, %c0_23], %40 {strides = array<i32>} : memref<16x128xf32, #tpu.memory_space<vmem>>, vector<1x128xf32>,
    %c2_i32_24 = arith.constant 2 : i32
    %42 = arith.muli %arg0, %c2_i32_24 : i32
    %c1_i32 = arith.constant 1 : i32
    %43 = arith.addi %42, %c1_i32 : i32
    %44 = arith.index_cast %43 : i32 to index
    %c0_25 = arith.constant 0 : index
    %45 = memref.load %arg1[%44, %c0_25] : memref<4x8xi32, #tpu.memory_space<smem>>
    %46 = arith.index_cast %45 : i32 to index
    %c0_26 = arith.constant 0 : index
    %47 = vector.load %arg2[%46, %c0_26] : memref<64x128xf32, #tpu.memory_space<vmem>>, vector<1x128xf32>
    %c8 = arith.constant 8 : index
    %c0_27 = arith.constant 0 : index
    %48 = vector.load %arg7[%c8, %c0_27] : memref<16x128xf32, #tpu.memory_space<vmem>>, vector<1x128xf32>
    tpu.vector_store %arg7[%c8, %c0_27], %47 {strides = array<i32>} : memref<16x128xf32, #tpu.memory_space<vmem>>, vector<1x128xf32>,
    %49 = arith.index_cast %43 : i32 to index
    %c1_28 = arith.constant 1 : index
    %50 = memref.load %arg1[%49, %c1_28] : memref<4x8xi32, #tpu.memory_space<smem>>
    %51 = arith.index_cast %50 : i32 to index
    %c0_29 = arith.constant 0 : index
    %52 = vector.load %arg2[%51, %c0_29] : memref<64x128xf32, #tpu.memory_space<vmem>>, vector<1x128xf32>
    %c9 = arith.constant 9 : index
    %c0_30 = arith.constant 0 : index
    %53 = vector.load %arg7[%c9, %c0_30] : memref<16x128xf32, #tpu.memory_space<vmem>>, vector<1x128xf32>
    tpu.vector_store %arg7[%c9, %c0_30], %52 {strides = array<i32>} : memref<16x128xf32, #tpu.memory_space<vmem>>, vector<1x128xf32>,
    %54 = arith.index_cast %43 : i32 to index
    %c2_31 = arith.constant 2 : index
    %55 = memref.load %arg1[%54, %c2_31] : memref<4x8xi32, #tpu.memory_space<smem>>
    %56 = arith.index_cast %55 : i32 to index
    %c0_32 = arith.constant 0 : index
    %57 = vector.load %arg2[%56, %c0_32] : memref<64x128xf32, #tpu.memory_space<vmem>>, vector<1x128xf32>
    %c10 = arith.constant 10 : index
    %c0_33 = arith.constant 0 : index
    %58 = vector.load %arg7[%c10, %c0_33] : memref<16x128xf32, #tpu.memory_space<vmem>>, vector<1x128xf32>
    tpu.vector_store %arg7[%c10, %c0_33], %57 {strides = array<i32>} : memref<16x128xf32, #tpu.memory_space<vmem>>, vector<1x128xf32>,
    %59 = arith.index_cast %43 : i32 to index
    %c3_34 = arith.constant 3 : index
    %60 = memref.load %arg1[%59, %c3_34] : memref<4x8xi32, #tpu.memory_space<smem>>
    %61 = arith.index_cast %60 : i32 to index
    %c0_35 = arith.constant 0 : index
    %62 = vector.load %arg2[%61, %c0_35] : memref<64x128xf32, #tpu.memory_space<vmem>>, vector<1x128xf32>
    %c11 = arith.constant 11 : index
    %c0_36 = arith.constant 0 : index
    %63 = vector.load %arg7[%c11, %c0_36] : memref<16x128xf32, #tpu.memory_space<vmem>>, vector<1x128xf32>
    tpu.vector_store %arg7[%c11, %c0_36], %62 {strides = array<i32>} : memref<16x128xf32, #tpu.memory_space<vmem>>, vector<1x128xf32>,
    %64 = arith.index_cast %43 : i32 to index
    %c4_37 = arith.constant 4 : index
    %65 = memref.load %arg1[%64, %c4_37] : memref<4x8xi32, #tpu.memory_space<smem>>
    %66 = arith.index_cast %65 : i32 to index
    %c0_38 = arith.constant 0 : index
    %67 = vector.load %arg2[%66, %c0_38] : memref<64x128xf32, #tpu.memory_space<vmem>>, vector<1x128xf32>
    %c12 = arith.constant 12 : index
    %c0_39 = arith.constant 0 : index
    %68 = vector.load %arg7[%c12, %c0_39] : memref<16x128xf32, #tpu.memory_space<vmem>>, vector<1x128xf32>
    tpu.vector_store %arg7[%c12, %c0_39], %67 {strides = array<i32>} : memref<16x128xf32, #tpu.memory_space<vmem>>, vector<1x128xf32>,
    %69 = arith.index_cast %43 : i32 to index
    %c5_40 = arith.constant 5 : index
    %70 = memref.load %arg1[%69, %c5_40] : memref<4x8xi32, #tpu.memory_space<smem>>
    %71 = arith.index_cast %70 : i32 to index
    %c0_41 = arith.constant 0 : index
    %72 = vector.load %arg2[%71, %c0_41] : memref<64x128xf32, #tpu.memory_space<vmem>>, vector<1x128xf32>
    %c13 = arith.constant 13 : index
    %c0_42 = arith.constant 0 : index
    %73 = vector.load %arg7[%c13, %c0_42] : memref<16x128xf32, #tpu.memory_space<vmem>>, vector<1x128xf32>
    tpu.vector_store %arg7[%c13, %c0_42], %72 {strides = array<i32>} : memref<16x128xf32, #tpu.memory_space<vmem>>, vector<1x128xf32>,
    %74 = arith.index_cast %43 : i32 to index
    %c6_43 = arith.constant 6 : index
    %75 = memref.load %arg1[%74, %c6_43] : memref<4x8xi32, #tpu.memory_space<smem>>
    %76 = arith.index_cast %75 : i32 to index
    %c0_44 = arith.constant 0 : index
    %77 = vector.load %arg2[%76, %c0_44] : memref<64x128xf32, #tpu.memory_space<vmem>>, vector<1x128xf32>
    %c14 = arith.constant 14 : index
    %c0_45 = arith.constant 0 : index
    %78 = vector.load %arg7[%c14, %c0_45] : memref<16x128xf32, #tpu.memory_space<vmem>>, vector<1x128xf32>
    tpu.vector_store %arg7[%c14, %c0_45], %77 {strides = array<i32>} : memref<16x128xf32, #tpu.memory_space<vmem>>, vector<1x128xf32>,
    %79 = arith.index_cast %43 : i32 to index
    %c7_46 = arith.constant 7 : index
    %80 = memref.load %arg1[%79, %c7_46] : memref<4x8xi32, #tpu.memory_space<smem>>
    %81 = arith.index_cast %80 : i32 to index
    %c0_47 = arith.constant 0 : index
    %82 = vector.load %arg2[%81, %c0_47] : memref<64x128xf32, #tpu.memory_space<vmem>>, vector<1x128xf32>
    %c15 = arith.constant 15 : index
    %c0_48 = arith.constant 0 : index
    %83 = vector.load %arg7[%c15, %c0_48] : memref<16x128xf32, #tpu.memory_space<vmem>>, vector<1x128xf32>
    tpu.vector_store %arg7[%c15, %c0_48], %82 {strides = array<i32>} : memref<16x128xf32, #tpu.memory_space<vmem>>, vector<1x128xf32>,
    %c0_49 = arith.constant 0 : index
    %c0_50 = arith.constant 0 : index
    %84 = vector.load %arg7[%c0_49, %c0_50] : memref<16x128xf32, #tpu.memory_space<vmem>>, vector<16x128xf32>
    %85 = vector.shape_cast %84 : vector<16x128xf32> to vector<2x8x128xf32>
    %86 = arith.truncf %84 : vector<16x128xf32> to vector<16x128xbf16>
    %c0_51 = arith.constant 0 : index
    %c0_52 = arith.constant 0 : index
    %87 = vector.load %arg3[%c0_51, %c0_52] : memref<128x256xbf16, #tpu.memory_space<vmem>>, vector<128x256xbf16>
    %cst = arith.constant dense<0.000000e+00> : vector<16x256xf32>
    %88 = tpu.matmul %86, %87, %cst {dimension_numbers = #tpu.dot_dimension_numbers<[1], [0], [0], [1], [0, 0, 1, 1], [], []>} : vector<16x128xbf16>, vector<128x256xbf16>, vector<16x256xf32> -> vector<16x256xf32>
    %c0_53 = arith.constant 0 : index
    %c0_54 = arith.constant 0 : index
    %89 = vector.load %arg4[%c0_53, %c0_54] : memref<1x256xf32, #tpu.memory_space<vmem>>, vector<1x256xf32>
    %90 = vector.broadcast %89 : vector<1x256xf32> to vector<16x256xf32>
    %91 = arith.addf %88, %90 : vector<16x256xf32>
    %92 = vector.extract_strided_slice %91 {offsets = [0, 0], sizes = [16, 128], strides = [1, 1]} : vector<16x256xf32> to vector<16x128xf32>
    %93 = vector.shape_cast %92 : vector<16x128xf32> to vector<2x8x128xf32>
    %94 = vector.extract_strided_slice %91 {offsets = [0, 128], sizes = [16, 128], strides = [1, 1]} : vector<16x256xf32> to vector<16x128xf32>
    %95 = vector.shape_cast %94 : vector<16x128xf32> to vector<2x8x128xf32>
    %96 = arith.truncf %93 : vector<2x8x128xf32> to vector<2x8x128xbf16>
    %97 = arith.truncf %95 : vector<2x8x128xf32> to vector<2x8x128xbf16>
    "tpu.trace_start"() <{level = 10 : i32, message = "ble,bme->blm"}> : () -> ()
    %cst_55 = arith.constant dense<0.000000e+00> : vector<2x8x8xf32>
    %98 = tpu.matmul %96, %97, %cst_55 {dimension_numbers = #tpu.dot_dimension_numbers<[2], [2], [1], [1], [0, 0, 0, 1, 1, 1], [0], [0]>} : vector<2x8x128xbf16>, vector<2x8x128xbf16>, vector<2x8x8xf32> -> vector<2x8x8xf32>
    "tpu.trace_stop"() : () -> ()
    %cst_56 = arith.constant dense<0xFF800000> : vector<2x8xf32>
    %99 = vector.multi_reduction <maximumf>, %98, %cst_56 [2] : vector<2x8x8xf32> to vector<2x8xf32>
    %100 = vector.shape_cast %99 : vector<2x8xf32> to vector<2x8x1xf32>
    %101 = vector.broadcast %100 : vector<2x8x1xf32> to vector<2x8x8xf32>
    %102 = arith.subf %98, %101 : vector<2x8x8xf32>
    %103 = math.exp %102 : vector<2x8x8xf32>
    %cst_57 = arith.constant dense<0.000000e+00> : vector<2x8xf32>
    %104 = vector.multi_reduction <add>, %103, %cst_57 [2] : vector<2x8x8xf32> to vector<2x8xf32>
    %105 = vector.shape_cast %104 : vector<2x8xf32> to vector<2x8x1xf32>
    %106 = tpu.reciprocal %105 {approx = true} : vector<2x8x1xf32> -> vector<2x8x1xf32>
    %107 = vector.broadcast %106 : vector<2x8x1xf32> to vector<2x8x8xf32>
    %108 = arith.mulf %103, %107 : vector<2x8x8xf32>
    %c0_58 = arith.constant 0 : index
    %c0_59 = arith.constant 0 : index
    %c0_60 = arith.constant 0 : index
    %109 = vector.load %arg5[%c0_58, %c0_59, %c0_60] : memref<1x2x128xf32, #tpu.memory_space<vmem>>, vector<1x2x128xf32>
    %110 = vector.shape_cast %109 : vector<1x2x128xf32> to vector<2x128xf32>
    %111 = vector.shape_cast %110 : vector<2x128xf32> to vector<2x1x128xf32>
    %112 = vector.broadcast %111 : vector<2x1x128xf32> to vector<2x8x128xf32>
    %113 = arith.mulf %85, %112 : vector<2x8x128xf32>
    %cst_61 = arith.constant dense<0.000000e+00> : vector<2x8xf32>
    %114 = vector.multi_reduction <add>, %113, %cst_61 [2] : vector<2x8x128xf32> to vector<2x8xf32>
    %115 = vector.shape_cast %114 : vector<2x8xf32> to vector<2x1x8xf32>
    %116 = vector.broadcast %115 : vector<2x1x8xf32> to vector<2x8x8xf32>
    %117 = arith.mulf %108, %116 : vector<2x8x8xf32>
    %cst_62 = arith.constant dense<0.000000e+00> : vector<2x8xf32>
    %118 = vector.multi_reduction <add>, %117, %cst_62 [2] : vector<2x8x8xf32> to vector<2x8xf32>
    %119 = vector.shape_cast %118 : vector<2x8xf32> to vector<1x2x8xf32>
    %c0_63 = arith.constant 0 : index
    %c0_64 = arith.constant 0 : index
    %c0_65 = arith.constant 0 : index
    %120 = vector.load %arg6[%c0_63, %c0_64, %c0_65] : memref<1x2x8xf32, #tpu.memory_space<vmem>>, vector<1x2x8xf32>
    tpu.vector_store %arg6[%c0_63, %c0_64, %c0_65], %119 {strides = array<i32>} : memref<1x2x8xf32, #tpu.memory_space<vmem>>, vector<1x2x8xf32>,
    return
  }
  func.func @transform_0(%arg0: i32, %arg1: memref<4x8xi32, #tpu.memory_space<smem>>) -> (i32, i32) {
    %c0_i32 = arith.constant 0 : i32
    %c0_i32_0 = arith.constant 0 : i32
    %c0_i32_1 = arith.constant 0 : i32
    return %c0_i32, %c0_i32_0 : i32, i32
  }
  func.func @transform_1(%arg0: i32, %arg1: memref<4x8xi32, #tpu.memory_space<smem>>) -> (i32, i32) {
    %c0_i32 = arith.constant 0 : i32
    %c0_i32_0 = arith.constant 0 : i32
    %c0_i32_1 = arith.constant 0 : i32
    return %c0_i32, %c0_i32_0 : i32, i32
  }
  func.func @transform_2(%arg0: i32, %arg1: memref<4x8xi32, #tpu.memory_space<smem>>) -> (i32, i32) {
    %c0_i32 = arith.constant 0 : i32
    %c0_i32_0 = arith.constant 0 : i32
    %c0_i32_1 = arith.constant 0 : i32
    return %c0_i32, %c0_i32_0 : i32, i32
  }
  func.func @transform_3(%arg0: i32, %arg1: memref<4x8xi32, #tpu.memory_space<smem>>) -> (i32, i32, i32) {
    %c0_i32 = arith.constant 0 : i32
    %c0_i32_0 = arith.constant 0 : i32
    %c0_i32_1 = arith.constant 0 : i32
    return %arg0, %c0_i32, %c0_i32_0 : i32, i32, i32
  }
  func.func @transform_4(%arg0: i32, %arg1: memref<4x8xi32, #tpu.memory_space<smem>>) -> (i32, i32, i32) {
    %c0_i32 = arith.constant 0 : i32
    %c0_i32_0 = arith.constant 0 : i32
    %c0_i32_1 = arith.constant 0 : i32
    return %arg0, %c0_i32, %c0_i32_0 : i32, i32, i32
  }
}

</mosaic_0001>

<bundles_post_ra>
// kernel: tpu_custom_call.1
= control target key start
LH: loop header
LB: loop body
LE: loop exit
PB: predicated region body
PF: predicated region fallthrough
CT: control target
= control target key end

     0   :  { %s1063_s18 = smov [#allocation4]   ;;  %s1311_s0 = inlined_call_operand.hbm [shape: s32[4,8], index: 0, kind: input, shape index: {}]   ;;  %s1312_s1 = inlined_call_operand.hbm [shape: f32[64,128], index: 1, kind: input, shape index: {}]   ;;  %s1313_s2 = inlined_call_operand.hbm [shape: bf16[128,256], index: 2, kind: input, shape index: {}]   ;;  %s1314_s3 = inlined_call_operand.vmem [shape: f32[1,256], index: 3, kind: input, shape index: {}]   ;;  %s1315_s4 = inlined_call_operand.vmem [shape: f32[2,2,128], index: 4, kind: input, shape index: {}]   ;;  %s1316_s5 = inlined_call_operand.hbm [shape: f32[2,2,8], index: 5, kind: output, shape index: {}]  }
   0x1   :  { %1318 = sst [smem:[#allocation15_spill]] %s1312_s1 }
   0x2   :  { %11 = dma.hbm_to_smem %s1311_s0, 64, %s1063_s18, [#allocation3] }
   0x3   :  { %1033 = dma.done.wait [#allocation3], 64 }
   0x4   :  { %1034 = vsyncadd [#allocation3], 4294967232 }
   0x5   :  { %13 = sfence }
   0x6   :  { %14 = vsyncpa [#allocation6], 0 }
   0x7   :  { %15 = vsyncpa [#allocation9], 0 }
   0x8   :  { %16 = vsyncpa [#allocation7], 0 }
   0x9   :  { %18 = vsyncpa [#allocation7 + $0x1], 0  ;;  %s1106_s21 = smov 0   ;;  %s1108_s22 = smov 0  }
   0xa   :  { %s1110_s23 = smov 0   ;;  %s1112_s24 = smov 0  }
   0xb LB: > { %s1127_s0 = sadd.s32 4294967295, %s1061_s24   ;;  %s778_s25 = sadd.s32 4294967294, %s1061_s24   ;;  %s1061_s24 = sphi %s1112_s24, %s1332_s24   ;;  %s1057_s23 = sphi %s1110_s23, %s1331_s23   ;;  %s1053_s22 = sphi %s1108_s22, %s1330_s22   ;;  %s1049_s21 = sphi %s1106_s21, %s1329_s21  }
   0xc   : > { %s1131_s26 = sadd.s32 1, %s1061_s24   ;;  %s120_s27 = sadd.s32 1, %s1057_s23 }
   0xd   : > { %s117_s28 = ssub.s32 %s1061_s24, %s1131_s26  ;;  %p130_p0 = scmp.ne.s32.totalorder %s1057_s23, %s1053_s22 }
   0xe   : > { %p118_p1 = scmp.eq.s32.totalorder %s117_s28, 0  ;;  %p131_p2 = scmp.eq.s32.totalorder %s1127_s0, 1 }
   0xf   : > { %p136_p3 = scmp.ne.s32.totalorder %s1053_s22, %s1049_s21  ;;  %p137_p4 = scmp.eq.s32.totalorder %s778_s25, 1 }
  0x10   : > { %s1142_s29 = scalar_select %p118_p1, %s1057_s23, %s120_s27  }
  0x11   : > { %p1144_p5 = por %p131_p2, %p130_p0  ;;  %p1148_p6 = por %p137_p4, %p136_p3 }
  0x12   : > { %p779_p7 = scmp.ge.s32.totalorder %s1061_s24, 1  ;;  %p144_p8 = scmp.lt.s32.totalorder %s1061_s24, 3 }
  0x13   : > { %s1320_s6 = scalar_select %p1148_p6, 1, 0 }
  0x14   : > { %p1317_p9 = scmp.eq.s32.totalorder %s1127_s0, 0  ;;  %p1155_p10 = pnand %p779_p7, %p144_p8 }
  0x15   : > { %s1064_s8 = smov [#allocation5]   ;;  %s1065_s11 = smov [#allocation8]  }
  0x16   : > { %s156_s9 = sshll.u32 %s1064_s8, 4  ;;  %p842_p11 = pneg %p1155_p10  ;;  %s157_s9 = int_to_ptr.vmem [resolvable:$true] %s156_s9 }
  0x17   : > { %s169_s12 = sshll.u32 %s1065_s11, 4  ;;  %s950_s13 = scalar_lea.vmem %s157_s9, 1024  ;;  %s170_s12 = int_to_ptr.vmem [resolvable:$true] %s169_s12 }
  0x18   : > { %p1163_p12 = pnand %p1317_p9, %p842_p11  ;;  %p951_p0 = scmp.ne.s32.totalorder %s157_s9, %s950_s13 }
  0x19   : > { %p958_p3 = scmp.lt.s32.totalorder %s157_s9, %s157_s9  ;;  %p959_p4 = scmp.lt.s32.totalorder %s950_s13, %s950_s13 }
  0x1a   : > { %p941_p13 = pneg %p1163_p12 }
  0x1b   : > { %p960_p7 = por %p959_p4, %p958_p3 }
  0x1c   : > { %p953_p1 = pnand %p951_p0, %p941_p13 }
  0x1e   : > { %p954_p2 = pneg %p953_p1 }
  0x20   : > { %p961_p8 = pnand %p960_p7, %p954_p2 }
  0x22   : > { %964 = shalt.err (!%p961_p8)
}
  0x23   : > { %s1066_s14 = smov 128   ;;  %s1067_s15 = smov 8  }
  0x24   : > { %s1323_s1 = sld [smem:[#allocation15_spill]]  ;;  %s976_s18 = scalar_lea.vmem %s170_s12, 2048 }
  0x25   : > { %p977_p11 = scmp.ne.s32.totalorder %s170_s12, %s976_s18  ;;  %p984_p9 = scmp.lt.s32.totalorder %s170_s12, %s170_s12 }
  0x26   : > { %p985_p6 = scmp.lt.s32.totalorder %s976_s18, %s976_s18 }
  0x27   : > { %p979_p0 = pnand %p977_p11, %p941_p13 }
  0x28   : > { %p986_p3 = por %p985_p6, %p984_p9 }
  0x29   : > { %p980_p1 = pneg %p979_p0 }
  0x2a   : > { %845 = dma.hbm_to_vmem [thread:$0]  (!%p1163_p12), %s1323_s1, 1024, %s157_s9, [#allocation6], %s1066_s14, %s1066_s14, %s1067_s15  }
  0x2b   : > { %p987_p2 = pnand %p986_p3, %p980_p1 }
  0x2d   : > { %990 = shalt.err (!%p987_p2)
}
  0x2e   : > { %848 = dma.hbm_to_vmem [thread:$0]  (!%p1163_p12), %s1313_s2, 2048, %s170_s12, [#allocation9], %s1066_s14, %s1066_s14, %s1067_s15  }
  0x2f   : > { %195 = sbr.rel (%p1155_p10) target bundleno = 971 (0x3cb), region = 36  ;;  %p1324_p4 = scmp.eq.s32.totalorder (!%p1155_p10), %s1127_s0, 0 }
  0x34   : > { %1036 = dma.done.wait (%p1324_p4), [#allocation6], 1024   ;;  %p1325_p13 = pmov %p1324_p4 }
  0x35   : > { %p1326_p7 = pmov %p1324_p4 }
  0x36   : > { %1038 = vsyncadd (%p1325_p13), [#allocation6], 4294966272 }
  0x37   : > { %1040 = dma.done.wait (%p1326_p7), [#allocation9], 2048   ;;  %p1327_p6 = pmov %p1324_p4 }
  0x38   : > { %s812_s25 = sshll.u32 %s1127_s0, 8  ;;  %v1068_v0 = vmov 0   ;;  %v899_v1 = vld [vmem:[#allocation8 + $0x74] ss:$8 sps:$4 sm:$0xff]   ;;  %v901_v2 = vld [vmem:[#allocation8 + $0x70] ss:$8 sps:$4 sm:$0xff]   ;;  %v332_v37 = vlaneseq }
  0x39   : > { %1042 = vsyncadd (%p1327_p6), [#allocation9], 4294965248  ;;  %454 = vmatprep.mubr.bf16.mxu0 %v1068_v0  ;;  %s235_s27 = sadd.s32 1, %s812_s25  ;;  %s1196_s28 = sld [smem:[#allocation4 + %s812_s25]]  ;;  %422 = vmatprep.subr.bf16.mxu0 %v899_v1  ;;  %v902_v3 = vld [vmem:[#allocation8 + $0x64] ss:$8 sps:$4 sm:$0xff]  }
  0x3a   : > { %s240_s7 = sadd.s32 2, %s812_s25  ;;  %s1198_s8 = sld [smem:[#allocation4 + %s235_s27]]  ;;  %423 = vmatpush1.bf16.msra.mxu0 %v901_v2  ;;  %v904_v4 = vld [vmem:[#allocation8 + $0x60] ss:$8 sps:$4 sm:$0xff]   ;;  %v905_v5 = vld [vmem:[#allocation8 + $0x54] ss:$8 sps:$4 sm:$0xff]  }
  0x3b   : > { %s245_s9 = sadd.s32 3, %s812_s25  ;;  %s1200_s10 = sld [smem:[#allocation4 + %s240_s7]]  ;;  %424 = vmatprep.subr.bf16.mxu0 %v902_v3  ;;  %v907_v6 = vld [vmem:[#allocation8 + $0x50] ss:$8 sps:$4 sm:$0xff]   ;;  %v908_v7 = vld [vmem:[#allocation8 + $0x44] ss:$8 sps:$4 sm:$0xff]  }
  0x3c   : > { %s250_s11 = sadd.s32 4, %s812_s25  ;;  %s1202_s12 = sld [smem:[#allocation4 + %s245_s9]]  ;;  %v910_v8 = vld [vmem:[#allocation8 + $0x40] ss:$8 sps:$4 sm:$0xff]   ;;  %v911_v9 = vld [vmem:[#allocation8 + $0x34] ss:$8 sps:$4 sm:$0xff]  }
  0x3d   : > { %s255_s13 = sadd.s32 5, %s812_s25  ;;  %s1204_s14 = sld [smem:[#allocation4 + %s250_s11]]  ;;  %v913_v19 = vld [vmem:[#allocation8 + $0x30] ss:$8 sps:$4 sm:$0xff]   ;;  %v914_v20 = vld [vmem:[#allocation8 + $0x24] ss:$8 sps:$4 sm:$0xff]  }
  0x3e   : > { %s260_s15 = sadd.s32 6, %s812_s25  ;;  %s1206_s16 = sld [smem:[#allocation4 + %s255_s13]]  ;;  %425 = vmatpush1.bf16.msra.mxu0 %v904_v4  ;;  %v916_v22 = vld [vmem:[#allocation8 + $0x20] ss:$8 sps:$4 sm:$0xff]   ;;  %v917_v23 = vld [vmem:[#allocation8 + $0x14] ss:$8 sps:$4 sm:$0xff]  }
  0x3f   : > { %s1208_s17 = sld [smem:[#allocation4 + %s260_s15]]  ;;  %s265_s18 = sadd.s32 7, %s812_s25  ;;  %426 = vmatprep.subr.bf16.mxu0 %v905_v5  ;;  %v919_v26 = vld [vmem:[#allocation8 + $0x10] ss:$8 sps:$4 sm:$0xff]   ;;  %v920_v28 = vld [vmem:[#allocation8 + $0x4] ss:$8 sps:$4 sm:$0xff]  }
  0x40   : > { %s1210_s19 = sld [smem:[#allocation4 + %s265_s18]]  ;;  %s1212_s20 = sadd.s32 128, %s812_s25  ;;  %v922_v32 = vld [vmem:[#allocation8] ss:$8 sps:$4 sm:$0xff]   ;;  %v1069_v36 = vmov 0.0   ;;  %vm1070_vm0 = vmmov 0  }
  0x41   : > { %s1215_s27 = sld [smem:[#allocation4 + %s1212_s20]]  ;;  %s276_s7 = sadd.s32 1, %s1212_s20  ;;  %820 = vmatprep.subr.bf16.mxu1 %v1069_v36  ;;  %822 = vmatprep.mubr.msk.bf16.mxu1 %vm1070_vm0, %v1069_v36  ;;  %v1243_v38 = vshrl.u32 %v332_v37, 7  ;;  %v330_v40 = vld [vmem:[%s1314_s3] sm:$0x3]  ;;  %vm549_vm1 = vcmask 64512  }
  0x42   : > { %s1218_s9 = sld [smem:[#allocation4 + %s276_s7]]  ;;  %s232_s25 = scalar_lea.vmem [#allocation5], %s1196_s28  ;;  %427 = vmatpush1.bf16.msra.mxu0 %v907_v6  ;;  %v1071_v2 = vmov 1966171168   ;;  %vm624_vm2 = vcmask 1041409   ;;  %vm665_vm3 = vcmask 58368  }
  0x43   : > { %v233_v10 = vld [vmem:[%s232_s25] sm:$0x1]  ;;  %s281_s11 = sadd.s32 2, %s1212_s20  ;;  %s286_s13 = sadd.s32 3, %s1212_s20  ;;  %428 = vmatprep.subr.bf16.mxu0 %v908_v7  ;;  %v338_v39 = vsub.s32 1, %v1243_v38  ;;  %v1250_v42 = vsub.s32 0, %v1243_v38  ;;  %v583_v3 = vunpack.c.l.s4 %v1071_v2 }
  0x44   : > { %234 = vst [vmem:[#allocation2] sm:$0x1] %v233_v10  ;;  %s237_s15 = scalar_lea.vmem [#allocation5], %s1198_s8  ;;  %s242_s18 = scalar_lea.vmem [#allocation5], %s1200_s10 }
  0x45   : > { %v238_v11 = vld [vmem:[%s237_s15] sm:$0x1]  ;;  %s247_s1 = scalar_lea.vmem [#allocation5], %s1202_s12  ;;  %s252_s28 = scalar_lea.vmem [#allocation5], %s1204_s14  ;;  %v339_v41 = vrot.slane %v330_v40, %v338_v39  ;;  %v335_v46 = vrot.slane %v330_v40, %v1250_v42  ;;  %v584_v4 = vunpack.c.0.s8 %v583_v3 }
  0x46   : > { %v243_v12 = vld [vmem:[%s242_s18] sm:$0x1]  ;;  %239 = vst [vmem:[#allocation2 + $0x1] sm:$0x1] %v238_v11  ;;  %s257_s7 = scalar_lea.vmem [#allocation5], %s1206_s16  ;;  %s262_s25 = scalar_lea.vmem [#allocation5], %s1208_s17  ;;  %429 = vmatpush1.bf16.msra.mxu0 %v910_v8 }
  0x47   : > { %v248_v13 = vld [vmem:[%s247_s1] sm:$0x1]  ;;  %244 = vst [vmem:[#allocation2 + $0x2] sm:$0x1] %v243_v12  ;;  %s267_s8 = scalar_lea.vmem [#allocation5], %s1210_s19  ;;  %s273_s1 = scalar_lea.vmem [#allocation5], %s1215_s27  ;;  %430 = vmatprep.subr.bf16.mxu0 %v911_v9  ;;  %v587_v5 = vsub.s32 %v584_v4, %v1243_v38 }
  0x48   : > { %249 = vst [vmem:[#allocation2 + $0x3] sm:$0x1] %v248_v13  ;;  %v253_v14 = vld [vmem:[%s252_s28] sm:$0x1]  ;;  %s282_s10 = sld [smem:[#allocation4 + %s281_s11]]  ;;  %s291_s12 = sadd.s32 4, %s1212_s20 }
  0x49   : > { %v258_v15 = vld [vmem:[%s257_s7] sm:$0x1]  ;;  %254 = vst [vmem:[#allocation2 + $0x4] sm:$0x1] %v253_v14  ;;  %s287_s14 = sld [smem:[#allocation4 + %s286_s13]]  ;;  %s278_s16 = scalar_lea.vmem [#allocation5], %s1218_s9 }
  0x4a   : > { %v263_v16 = vld [vmem:[%s262_s25] sm:$0x1]  ;;  %259 = vst [vmem:[#allocation2 + $0x5] sm:$0x1] %v258_v15  ;;  %s292_s17 = sld [smem:[#allocation4 + %s291_s12]]  ;;  %s296_s19 = sadd.s32 5, %s1212_s20  ;;  %431 = vmatpush1.bf16.msra.mxu0 %v913_v19 }
  0x4b   : > { %264 = vst [vmem:[#allocation2 + $0x6] sm:$0x1] %v263_v16  ;;  %v268_v17 = vld [vmem:[%s267_s8] sm:$0x1]  ;;  %s297_s15 = sld [smem:[#allocation4 + %s296_s19]]  ;;  %s301_s27 = sadd.s32 6, %s1212_s20  ;;  %432 = vmatprep.subr.bf16.mxu0 %v914_v20 }
  0x4c   : > { %v274_v18 = vld [vmem:[%s273_s1] sm:$0x1]  ;;  %269 = vst [vmem:[#allocation2 + $0x7] sm:$0x1] %v268_v17  ;;  %s302_s18 = sld [smem:[#allocation4 + %s301_s27]]  ;;  %s306_s28 = sadd.s32 7, %s1212_s20 }
  0x4d   : > { %275 = vst [vmem:[#allocation2 + $0x8] sm:$0x1] %v274_v18  ;;  %v279_v21 = vld [vmem:[%s278_s16] sm:$0x1]  ;;  %s307_s11 = sld [smem:[#allocation4 + %s306_s28]]  ;;  %p224_p9 = scmp.lt.s32.totalorder %s1127_s0, 1 }
  0x4e   : > { %280 = vst [vmem:[#allocation2 + $0x9] sm:$0x1] %v279_v21  ;;  %s283_s7 = scalar_lea.vmem [#allocation5], %s282_s10  ;;  %433 = vmatpush1.bf16.msra.mxu0 %v916_v22 }
  0x4f   : > { %v284_v24 = vld [vmem:[%s283_s7] sm:$0x1]  ;;  %s288_s13 = scalar_lea.vmem [#allocation5], %s287_s14  ;;  %434 = vmatprep.subr.bf16.mxu0 %v917_v23 }
  0x50   : > { %285 = vst [vmem:[#allocation2 + $0xa] sm:$0x1] %v284_v24  ;;  %v289_v25 = vld [vmem:[%s288_s13] sm:$0x1]  ;;  %s293_s9 = scalar_lea.vmem [#allocation5], %s292_s17 }
  0x51   : > { %290 = vst [vmem:[#allocation2 + $0xb] sm:$0x1] %v289_v25  ;;  %v294_v27 = vld [vmem:[%s293_s9] sm:$0x1]  ;;  %s298_s25 = scalar_lea.vmem [#allocation5], %s297_s15  ;;  %v615_v25 = vand.u32 127, %v332_v37 }
  0x52   : > { %295 = vst [vmem:[#allocation2 + $0xc] sm:$0x1] %v294_v27  ;;  %v299_v29 = vld [vmem:[%s298_s25] sm:$0x1]  ;;  %s303_s20 = scalar_lea.vmem [#allocation5], %s302_s18  ;;  %435 = vmatpush1.bf16.msra.mxu0 %v919_v26  ;;  %s221_s15 = sand.u32 1, %s1053_s22  }
  0x53   : > { %300 = vst [vmem:[#allocation2 + $0xd] sm:$0x1] %v299_v29  ;;  %v304_v30 = vld [vmem:[%s303_s20] sm:$0x1]  ;;  %s308_s8 = scalar_lea.vmem [#allocation5], %s307_s11  ;;  %436 = vmatprep.subr.bf16.mxu0 %v920_v28  ;;  %v618_v27 = vsub.s32 %v615_v25, %v1243_v38  ;;  %s786_s27 = sshll.u32 %s221_s15, 1 }
  0x54   : > { %305 = vst [vmem:[#allocation2 + $0xe] sm:$0x1] %v304_v30  ;;  %v309_v31 = vld [vmem:[%s308_s8] sm:$0x1]  ;;  %s225_s12 = scalar_select %p224_p9, %s1127_s0, 1 }
  0x55   : > { %310 = vst [vmem:[#allocation2 + $0xf] sm:$0x1] %v309_v31  ;;  %v311_v33 = vld [vmem:[#allocation2] sm:$0xff]  ;;  %s809_s18 = sshll.u32 %s1127_s0, 5  ;;  %s223_s28 = scalar_lea.vmem [#allocation10], %s786_s27 }
  0x56   : > { %437 = vmatpush1.bf16.msra.mxu0 %v922_v32  ;;  %s787_s14 = sshll.u32 %s225_s12, 1  ;;  %s681_s11 = sshll.u32 %s223_s28, 4  ;;  %s682_s11 = int_to_ptr.vmem [resolvable:$true] %s681_s11 }
  0x57   : > { %s227_s19 = scalar_lea.vmem %s1315_s4, %s787_s14  ;;  %s1276_s9 = scalar_lea.hbm %s1316_s5, %s809_s18 }
  0x58   : > { %v807_v6 = vld.sshfl [vmem:[%s227_s19] sm:$0x11 pattern:$0x75316420]  ;;  %s668_s25 = scalar_lea.sflag [#allocation7], %s221_s15  ;;  %s991_s20 = scalar_lea.vmem %s682_s11, 32 }
  0x59   : > { %v588_v7 = vrot.slane %v807_v6, %v587_v5  ;;  %v581_v8 = vcombine.high %v807_v6, %v807_v6  ;;  %p992_p10 = scmp.ne.s32.totalorder %s682_s11, %s991_s20  ;;  %s1072_s0 = smov [#allocation10]  }
  0x5a   : > { %s995_s8 = sshll.u32 %s1072_s0, 4  ;;  %s996_s8 = int_to_ptr.vmem [resolvable:$false] %s995_s8 }
  0x5b   : > { %v599_v9 = vrot.slane %v588_v7, %v1250_v42  ;;  %v595_v10 = vrot.slane %v581_v8, %v587_v5  ;;  %p993_p12 = pnand %p992_p10, %p1144_p5  ;;  %s997_s1 = scalar_lea.vmem %s996_s8, 64 }
  0x5c   : > { %v1238_v34 = vld [vmem:[#allocation2 + $0x8] sm:$0xff]  ;;  %p998_p11 = scmp.lt.s32.totalorder %s682_s11, %s996_s8  ;;  %p999_p0 = scmp.lt.s32.totalorder %s997_s1, %s991_s20 }
  0x5d   : > { %v313_v35 = vpack.c.bf16 %v1238_v34, %v311_v33  ;;  %v606_v11 = vmul.f32 %v599_v9, %v311_v33  ;;  %v603_v20 = vrot.slane %v595_v10, %v1250_v42  ;;  %p994_p8 = pneg %p993_p12 }
  0x5e   : > { %p1000_p1 = por %p999_p0, %p998_p11 }
  0x5f   : > { %455 = vmatmul.mubr.bf16.vlgmr.msra.gmra.mxu0 %v313_v35  ;;  %v607_v23 = vmul.f32 %v603_v20, %v1238_v34 }
  0x60   : > { %p1001_p3 = pnand %p1000_p1, %p994_p8 }
 0x11f   : > { %v456_v43 = vpop.f32.mrf.mxu0 }
 0x120   : > { %v457_v50 = vadd.f32 %v456_v43, %v335_v46 }
 0x121   : > { %v458_v44 = vpop.f32.mrf.mxu0 }
 0x122   : > { %v459_v45 = vadd.f32 %v458_v44, %v339_v41  ;;  %v465_v52 = vpack.c.bf16 %v457_v50, %v457_v50 }
 0x123   : > { %v460_v47 = vpop.f32.mrf.mxu0 }
 0x124   : > { %v467_v48 = vpack.c.bf16 %v459_v45, %v459_v45  ;;  %v461_v54 = vadd.f32 %v460_v47, %v335_v46 }
 0x125   : > { %v462_v49 = vpop.f32.mrf.mxu0 }
 0x126   : > { %821 = vmatpush3.bf16.xpose.msra.mxu1 %v467_v48  ;;  %v463_v51 = vadd.f32 %v462_v49, %v339_v41  ;;  %v466_v55 = vpack.c.bf16 %v461_v54, %v461_v54 }
 0x127   : > { %826 = vmatprep.subr.bf16.mxu1 %v1069_v36 }
 0x128   : > { %v468_v53 = vpack.c.bf16 %v463_v51, %v463_v51 }
 0x12d   : > { %823 = vmatmul.mubr.bf16.vlgmr.msra.gmra.mxu1 %v465_v52 }
 0x12e   : > { %827 = vmatpush3.bf16.xpose.msra.mxu1 %v468_v53  ;;  %828 = vmatprep.mubr.msk.bf16.mxu1 %vm1070_vm0, %v1069_v36 }
 0x135   : > { %829 = vmatmul.mubr.bf16.vlgmr.msra.gmra.mxu1 %v466_v55 }
 0x1ed   : > { %v503_v56 = vpop.f32.mrf.mxu1 }
 0x1ee   : > { %v550_v57 = vsel %vm549_vm1, %v503_v56, -inf }
 0x1ef   : > { %551 = vmax.xlane.f32.xlu0 %v550_v57  ;;  %v824_v58 = vpop.f32.mrf.mxu1 }
 0x1f1   : > { %v506_v59 = vpop.f32.mrf.mxu1 }
 0x1f3   : > { %v825_v60 = vpop.f32.mrf.mxu1 }
 0x1f5   : > { %v543_v61 = vpop.f32.mrf.mxu1 }
 0x1f6   : > { %v553_v62 = vsel %vm549_vm1, %v543_v61, -inf }
 0x1f7   : > { %554 = vmax.xlane.f32.xlu0 %v553_v62  ;;  %v830_v63 = vpop.f32.mrf.mxu1 }
 0x1f9   : > { %v546_v0 = vpop.f32.mrf.mxu1 }
 0x1fb   : > { %v831_v1 = vpop.f32.mrf.mxu1  ;;  %608 = vadd.xlane.f32.xlu0 %v606_v11 }
 0x278   : > { %v552_v12 = vpop.xlane.xlu0 %551 }
 0x279   : > { %v556_v13 = vsub.f32 %v503_v56, %v552_v12 }
 0x27b   : > { %v558_v14 = vmul.f32 1.442695, %v556_v13 }
 0x27d   : > { %923 = vpow2.f32 %v558_v14 }
 0x280   : > { %v555_v15 = vpop.xlane.xlu0 %554 }
 0x281   : > { %v557_v16 = vsub.f32 %v543_v61, %v555_v15 }
 0x283   : > { %v560_v17 = vmul.f32 1.442695, %v557_v16 }
 0x284   : > { %v609_v28 = vpop.xlane.xlu0 %608 }
 0x285   : > { %925 = vpow2.f32 %v560_v17  ;;  %v619_v29 = vrot.slane %v609_v28, %v618_v27 }
 0x28a   : > { %v924_v18 = vpop.eup %923 }
 0x28b   : > { %v562_v19 = vsel %vm549_vm1, %v924_v18, 0.0 }
 0x28c   : > { %563 = vadd.xlane.f32.xlu1 %v562_v19 }
 0x292   : > { %v926_v21 = vpop.eup %925 }
 0x293   : > { %v565_v22 = vsel %vm549_vm1, %v926_v21, 0.0 }
 0x294   : > { %566 = vadd.xlane.f32.xlu1 %v565_v22 }
 0x298   : > { %610 = vadd.xlane.f32.xlu1 %v607_v23 }
 0x315   : > { %v564_v24 = vpop.xlane.xlu1 %563 }
 0x316   : > { %927 = vrcp.f32 %v564_v24 }
 0x31d   : > { %v567_v26 = vpop.xlane.xlu1 %566 }
 0x31e   : > { %929 = vrcp.f32 %v567_v26 }
 0x321   : > { %v611_v33 = vpop.xlane.xlu1 %610 }
 0x322   : > { %v623_v34 = vrot.slane %v611_v33, %v618_v27 }
 0x323   : > { %v928_v30 = vpop.eup %927 }
 0x324   : > { %v570_v31 = vmul.f32 %v928_v30, %v924_v18 }
 0x326   : > { %v645_v32 = vmul.f32 %v619_v29, %v570_v31 }
 0x328   : > { %v647_v35 = vsel %vm549_vm1, %v645_v32, 0.0 }
 0x329   : > { %648 = vadd.xlane.f32.xlu0 %v647_v35 }
 0x32b   : > { %v930_v36 = vpop.eup %929 }
 0x32c   : > { %v571_v39 = vmul.f32 %v930_v36, %v926_v21 }
 0x32e   : > { %v646_v40 = vmul.f32 %v623_v34, %v571_v39 }
 0x330   : > { %v650_v37 = vsel %vm549_vm1, %v646_v40, 0.0 }
 0x331   : > { %651 = vadd.xlane.f32.xlu1 %v650_v37 }
 0x3b2   : > { %v649_v38 = vpop.xlane.xlu0 %648 }
 0x3b3   : > { %v658_v42 = vrot.slane %v649_v38, %v618_v27 }
 0x3ba   : > { %v652_v41 = vpop.xlane.xlu1 %651 }
 0x3bb   : > { %v662_v43 = vrot.slane %v652_v41, %v618_v27 }
 0x3bd   : > { %v663_v44 = vsel %vm624_vm2, %v662_v43, %v658_v42 }
 0x3be   : > { %666 = vst.msk [vmem:[%s223_s28] sm:$0x3] %vm665_vm3, %v663_v44 }
 0x3bf   : > { %1004 = shalt.err (!%p1001_p3)
}
 0x3c0   : > { %s1005_s10 = scalar_lea.hbm %s1276_s9, 32  ;;  %s1009_s16 = scalar_lea.hbm %s1316_s5, 64 }
 0x3c1   : > { %p1006_p2 = scmp.ne.s32.totalorder %s1276_s9, %s1005_s10  ;;  %p1010_p7 = scmp.lt.s32.totalorder %s1276_s9, %s1316_s5 }
 0x3c2   : > { %p1011_p6 = scmp.lt.s32.totalorder %s1009_s16, %s1005_s10 }
 0x3c3   : > { %p1007_p4 = pnand %p1006_p2, %p1144_p5 }
 0x3c4   : > { %p1012_p9 = por %p1011_p6, %p1010_p7 }
 0x3c5   : > { %p1008_p13 = pneg %p1007_p4 }
 0x3c7   : > { %p1013_p10 = pnand %p1012_p9, %p1008_p13 }
 0x3c9   : > { %1016 = shalt.err (!%p1013_p10)
}
 0x3ca   : > { %840 = dma.vmem_to_hbm [thread:$0]  (%p1144_p5), %s682_s11, 32, %s1276_s9, %s668_s25  }
 0x3cb PF: > { %p857_p12 = scmp.ge.s32.totalorder %s1061_s24, 2  ;;  %s693_s15 = sand.u32 1, %s1049_s21  }
 0x3cc   : > { %p1328_p8 = scmp.ne.s32.totalorder %s1320_s6, 0  ;;  %s694_s27 = scalar_lea.sflag [#allocation7], %s693_s15 }
 0x3ce   : > { %p850_p11 = pnand %p857_p12, %p1328_p8 }
 0x3d0   : > { %p851_p0 = pneg %p850_p11 }
 0x3d2   : > { %1044 = dma.done.wait (%p851_p0), %s694_s27, 32  }
 0x3d3   : > { %1046 = vsyncadd (%p851_p0), %s694_s27, 4294967264  ;;  %p21_p1 = scmp.ge.s32.totalorder %s1131_s26, 4   ;;  %s1329_s21 = smov %s1053_s22 }
 0x3d4   : > { %s1330_s22 = smov %s1057_s23  ;;  %s1331_s23 = smov %s1142_s29 }
 0x3d5   : > { %s1332_s24 = smov %s1131_s26  ;;  %23 = sbr.rel (!%p21_p1) target bundleno = 11 (0xb), region = 96 }
 0x3da   :  { %699 = vsyncpa [#allocation6], 1 }
 0x3db   :  { %701 = vsyncpa [#allocation6 + $0x1], 1 }
 0x3dc   :  { %702 = vsyncpa [#allocation9], 1 }
 0x3dd   :  { %703 = vsyncpa [#allocation7], 1 }
 0x3de   :  { %705 = vsyncpa [#allocation7 + $0x1], 1 }

</bundles_post_ra>
